<compile_context>
chip_gen: v6e
topology: v6e:2x2x1
jax: 0.10.0
libtpu: 0.0.40
codegen_flags: <defaults>
</compile_context>

<pallas_src>
import jax
import jax.numpy as jnp
from jax.experimental import pallas as pl
from jax.experimental.pallas import tpu as pltpu


def _round_up(n: int, m: int) -> int:
    return ((n + m - 1) // m) * m


def policy_network_kernel(x_ref, w1_ref, b1_ref, w2_ref, b2_ref, w3_ref, b3_ref,
                          o_ref):
    """Fused MLP tile: relu(x@W1+b1) -> relu(.@W2+b2) -> softmax(.@W3+b3, axis=1)."""
    x = x_ref[...]                      # [TB, S], bf16 (or f32)
    mdt = w2_ref.dtype                  # matmul-input dtype

    # fc1 + relu (f32 accumulation on the MXU)
    h1 = jnp.dot(x, w1_ref[...], preferred_element_type=jnp.float32) + b1_ref[...]
    h1 = jnp.maximum(h1, 0.0)

    # fc2 + relu
    h2 = jnp.dot(h1.astype(mdt), w2_ref[...],
                 preferred_element_type=jnp.float32) + b2_ref[...]
    h2 = jnp.maximum(h2, 0.0)

    # fc3 + numerically-stable softmax over the (padded) action axis.
    # Padded action columns carry a -1e30 bias => exp() underflows to exactly 0
    # and they drop out of the denominator.
    logits = jnp.dot(h2.astype(mdt), w3_ref[...],
                     preferred_element_type=jnp.float32) + b3_ref[...]
    m = jnp.max(logits, axis=1, keepdims=True)
    e = jnp.exp(logits - m)
    denom = jnp.sum(e, axis=1, keepdims=True)
    o_ref[...] = e * pl.reciprocal(denom, approx=True)   # EUP vrcp, off VALU path


def policy_network_forward(x, params, *, block_rows=256, use_bf16=True):
    """PolicyNetwork forward. x: [batch, state_dim] f32; weights stored [in, out]."""
    w1, b1, w2, b2, w3, b3 = params
    batch, state_dim = x.shape
    hidden = w1.shape[1]
    action_dim = w3.shape[1]

    H = _round_up(hidden, 128)        # MXU/lane-dense hidden width
    A = _round_up(action_dim, 128)    # lane-dense output width
    NEG = -1e30                       # "minus infinity" for padded logits

    # Zero-pad hidden (inert through ReLU); pad final bias so extra softmax
    # columns vanish; real weight columns beyond action_dim are zero.
    w1p = jnp.pad(w1, ((0, 0), (0, H - hidden)))
    b1p = jnp.pad(b1, ((0, 0), (0, H - hidden)))
    w2p = jnp.pad(w2, ((0, H - hidden), (0, H - hidden)))
    b2p = jnp.pad(b2, ((0, 0), (0, H - hidden)))
    w3p = jnp.pad(w3, ((0, H - hidden), (0, A - action_dim)))
    b3p = jnp.pad(b3, ((0, 0), (0, A - action_dim)), constant_values=NEG)

    mdt = jnp.bfloat16 if use_bf16 else jnp.float32
    xc = x.astype(mdt)
    w1c, w2c, w3c = w1p.astype(mdt), w2p.astype(mdt), w3p.astype(mdt)

    # Batch tiling: stream TB-row tiles over a 1-D "parallel" grid.
    tb = max(8, min(_round_up(block_rows, 8), _round_up(batch, 8)))
    bp = _round_up(batch, tb)
    xp = jnp.pad(xc, ((0, bp - batch), (0, 0)))
    num_tiles = bp // tb

    const = lambda shape: pl.BlockSpec(shape, lambda i: (0, 0))
    flops = 2 * bp * (state_dim * H + H * H + H * A)
    bytes_accessed = (xp.size * xp.dtype.itemsize
                      + sum(int(a.size) * a.dtype.itemsize
                            for a in (w1c, b1p, w2c, b2p, w3c, b3p))
                      + bp * A * 4)
    cost = pl.CostEstimate(flops=flops, transcendentals=bp * A,
                           bytes_accessed=bytes_accessed)

    out = pl.pallas_call(
        policy_network_kernel,
        out_shape=jax.ShapeDtypeStruct((bp, A), jnp.float32),
        grid=(num_tiles,),
        in_specs=[
            pl.BlockSpec((tb, state_dim), lambda i: (i, 0)),   # streamed activations
            const((state_dim, H)), const((1, H)),              # fc1 (VMEM-resident)
            const((H, H)), const((1, H)),                      # fc2
            const((H, A)), const((1, A)),                      # fc3
        ],
        out_specs=pl.BlockSpec((tb, A), lambda i: (i, 0)),     # lane-dense stores
        compiler_params=pltpu.CompilerParams(
            dimension_semantics=("parallel",)),
        cost_estimate=cost,
    )(xp, w1c, b1p, w2c, b2p, w3c, b3p)

    return out[:batch, :action_dim]


def init_params(key, state_dim, action_dim, hidden_dim):
    """PyTorch nn.Linear-style init: U(-1/sqrt(fan_in), 1/sqrt(fan_in)).
    Weights are stored transposed ([in, out]) relative to PyTorch's [out, in]."""
    def linear(k, fan_in, fan_out):
        kw, kb = jax.random.split(k)
        bound = 1.0 / jnp.sqrt(jnp.float32(fan_in))
        w = jax.random.uniform(kw, (fan_in, fan_out), jnp.float32, -bound, bound)
        b = jax.random.uniform(kb, (1, fan_out), jnp.float32, -bound, bound)
        return w, b

    k1, k2, k3 = jax.random.split(key, 3)
    w1, b1 = linear(k1, state_dim, hidden_dim)
    w2, b2 = linear(k2, hidden_dim, hidden_dim)
    w3, b3 = linear(k3, hidden_dim, action_dim)
    return (w1, b1, w2, b2, w3, b3)


def reference_forward(x, params, *, use_bf16=True):
    """Plain-XLA reference; optionally with the same bf16 matmul inputs as the kernel."""
    w1, b1, w2, b2, w3, b3 = params
    mdt = jnp.bfloat16 if use_bf16 else jnp.float32
    c = lambda a: a.astype(mdt)
    h1 = jnp.maximum(jnp.dot(c(x), c(w1), preferred_element_type=jnp.float32) + b1, 0.0)
    h2 = jnp.maximum(jnp.dot(c(h1), c(w2), preferred_element_type=jnp.float32) + b2, 0.0)
    logits = jnp.dot(c(h2), c(w3), preferred_element_type=jnp.float32) + b3
    return jax.nn.softmax(logits, axis=1)


if __name__ == "__main__":
    batch = 512          # >= 128 rows so MXU rows / sublanes are actually used
    state_dim = 8
    action_dim = 4
    hidden_dim = 64      # PolicyNetwork default

    key = jax.random.PRNGKey(0)
    kx, kp = jax.random.split(key)
    x = jax.random.normal(kx, (batch, state_dim), jnp.float32)
    params = init_params(kp, state_dim, action_dim, hidden_dim)

    out = policy_network_forward(x, params, block_rows=256, use_bf16=True)
    jax.block_until_ready(out)

    assert out.shape == (batch, action_dim)
    # Rows are valid probability distributions (approx-reciprocal tolerance).
    assert jnp.allclose(jnp.sum(out, axis=1), 1.0, atol=2e-3)
    # Matches an XLA reference using the same bf16 matmul inputs.
    ref = reference_forward(x, params, use_bf16=True)
    assert jnp.allclose(out, ref, atol=2e-3, rtol=2e-3)
    # Close to exact f32 module semantics as well.
    ref_f32 = reference_forward(x, params, use_bf16=False)
    assert jnp.allclose(out, ref_f32, atol=5e-2)

    print("KERNEL_OK")
</pallas_src>

<mosaic_0001>
module attributes {stable_mosaic.version = 11 : i64} {
  func.func @policy_network_kernel(%arg0: i32, %arg1: memref<256x8xbf16, #tpu.memory_space<vmem>>, %arg2: memref<8x128xbf16, #tpu.memory_space<vmem>>, %arg3: memref<1x128xf32, #tpu.memory_space<vmem>>, %arg4: memref<128x128xbf16, #tpu.memory_space<vmem>>, %arg5: memref<1x128xf32, #tpu.memory_space<vmem>>, %arg6: memref<128x128xbf16, #tpu.memory_space<vmem>>, %arg7: memref<1x128xf32, #tpu.memory_space<vmem>>, %arg8: memref<256x128xf32, #tpu.memory_space<vmem>>) attributes {dimension_semantics = [#tpu.dimension_semantics<parallel>], iteration_bounds = array<i64: 2>, scalar_prefetch = 0 : i64, scratch_operands = 0 : i64, tpu.core_type = #tpu.core_type<tc>, window_params = [{transform_indices = @transform_0, window_bounds = array<i64: 256, 8>}, {pipeline_mode = #tpu.pipeline_mode<synchronous>, transform_indices = @transform_1, window_bounds = array<i64: 8, 128>}, {pipeline_mode = #tpu.pipeline_mode<synchronous>, transform_indices = @transform_2, window_bounds = array<i64: 1, 128>}, {pipeline_mode = #tpu.pipeline_mode<synchronous>, transform_indices = @transform_3, window_bounds = array<i64: 128, 128>}, {pipeline_mode = #tpu.pipeline_mode<synchronous>, transform_indices = @transform_4, window_bounds = array<i64: 1, 128>}, {pipeline_mode = #tpu.pipeline_mode<synchronous>, transform_indices = @transform_5, window_bounds = array<i64: 128, 128>}, {pipeline_mode = #tpu.pipeline_mode<synchronous>, transform_indices = @transform_6, window_bounds = array<i64: 1, 128>}, {transform_indices = @transform_7, window_bounds = array<i64: 256, 128>}]} {
    %c0 = arith.constant 0 : index
    %c0_0 = arith.constant 0 : index
    %0 = vector.load %arg1[%c0, %c0_0] : memref<256x8xbf16, #tpu.memory_space<vmem>>, vector<256x8xbf16>
    %c0_1 = arith.constant 0 : index
    %c0_2 = arith.constant 0 : index
    %1 = vector.load %arg2[%c0_1, %c0_2] : memref<8x128xbf16, #tpu.memory_space<vmem>>, vector<8x128xbf16>
    %cst = arith.constant dense<0.000000e+00> : vector<256x128xf32>
    %2 = tpu.matmul %0, %1, %cst {dimension_numbers = #tpu.dot_dimension_numbers<[1], [0], [0], [1], [0, 0, 1, 1], [], []>} : vector<256x8xbf16>, vector<8x128xbf16>, vector<256x128xf32> -> vector<256x128xf32>
    %c0_3 = arith.constant 0 : index
    %c0_4 = arith.constant 0 : index
    %3 = vector.load %arg3[%c0_3, %c0_4] : memref<1x128xf32, #tpu.memory_space<vmem>>, vector<1x128xf32>
    %4 = vector.broadcast %3 : vector<1x128xf32> to vector<256x128xf32>
    %5 = arith.addf %2, %4 : vector<256x128xf32>
    %cst_5 = arith.constant 0.000000e+00 : f32
    %6 = vector.broadcast %cst_5 : f32 to vector<256x128xf32>
    %7 = arith.maximumf %5, %6 : vector<256x128xf32>
    %8 = arith.truncf %7 : vector<256x128xf32> to vector<256x128xbf16>
    %c0_6 = arith.constant 0 : index
    %c0_7 = arith.constant 0 : index
    %9 = vector.load %arg4[%c0_6, %c0_7] : memref<128x128xbf16, #tpu.memory_space<vmem>>, vector<128x128xbf16>
    %cst_8 = arith.constant dense<0.000000e+00> : vector<256x128xf32>
    %10 = tpu.matmul %8, %9, %cst_8 {dimension_numbers = #tpu.dot_dimension_numbers<[1], [0], [0], [1], [0, 0, 1, 1], [], []>} : vector<256x128xbf16>, vector<128x128xbf16>, vector<256x128xf32> -> vector<256x128xf32>
    %c0_9 = arith.constant 0 : index
    %c0_10 = arith.constant 0 : index
    %11 = vector.load %arg5[%c0_9, %c0_10] : memref<1x128xf32, #tpu.memory_space<vmem>>, vector<1x128xf32>
    %12 = vector.broadcast %11 : vector<1x128xf32> to vector<256x128xf32>
    %13 = arith.addf %10, %12 : vector<256x128xf32>
    %cst_11 = arith.constant 0.000000e+00 : f32
    %14 = vector.broadcast %cst_11 : f32 to vector<256x128xf32>
    %15 = arith.maximumf %13, %14 : vector<256x128xf32>
    %16 = arith.truncf %15 : vector<256x128xf32> to vector<256x128xbf16>
    %c0_12 = arith.constant 0 : index
    %c0_13 = arith.constant 0 : index
    %17 = vector.load %arg6[%c0_12, %c0_13] : memref<128x128xbf16, #tpu.memory_space<vmem>>, vector<128x128xbf16>
    %cst_14 = arith.constant dense<0.000000e+00> : vector<256x128xf32>
    %18 = tpu.matmul %16, %17, %cst_14 {dimension_numbers = #tpu.dot_dimension_numbers<[1], [0], [0], [1], [0, 0, 1, 1], [], []>} : vector<256x128xbf16>, vector<128x128xbf16>, vector<256x128xf32> -> vector<256x128xf32>
    %c0_15 = arith.constant 0 : index
    %c0_16 = arith.constant 0 : index
    %19 = vector.load %arg7[%c0_15, %c0_16] : memref<1x128xf32, #tpu.memory_space<vmem>>, vector<1x128xf32>
    %20 = vector.broadcast %19 : vector<1x128xf32> to vector<256x128xf32>
    %21 = arith.addf %18, %20 : vector<256x128xf32>
    %cst_17 = arith.constant dense<0xFF800000> : vector<256xf32>
    %22 = vector.multi_reduction <maximumf>, %21, %cst_17 [1] : vector<256x128xf32> to vector<256xf32>
    %23 = vector.shape_cast %22 : vector<256xf32> to vector<256x1xf32>
    %24 = vector.broadcast %23 : vector<256x1xf32> to vector<256x128xf32>
    %25 = arith.subf %21, %24 : vector<256x128xf32>
    %26 = math.exp %25 : vector<256x128xf32>
    %cst_18 = arith.constant dense<0.000000e+00> : vector<256xf32>
    %27 = vector.multi_reduction <add>, %26, %cst_18 [1] : vector<256x128xf32> to vector<256xf32>
    %28 = vector.shape_cast %27 : vector<256xf32> to vector<256x1xf32>
    %29 = tpu.reciprocal %28 {approx = true} : vector<256x1xf32> -> vector<256x1xf32>
    %30 = vector.broadcast %29 : vector<256x1xf32> to vector<256x128xf32>
    %31 = arith.mulf %26, %30 : vector<256x128xf32>
    %c0_19 = arith.constant 0 : index
    %c0_20 = arith.constant 0 : index
    %32 = vector.load %arg8[%c0_19, %c0_20] : memref<256x128xf32, #tpu.memory_space<vmem>>, vector<256x128xf32>
    tpu.vector_store %arg8[%c0_19, %c0_20], %31 {strides = array<i32>} : memref<256x128xf32, #tpu.memory_space<vmem>>, vector<256x128xf32>,
    return
  }
  func.func @transform_0(%arg0: i32) -> (i32, i32) {
    %c0_i32 = arith.constant 0 : i32
    %c0_i32_0 = arith.constant 0 : i32
    return %arg0, %c0_i32 : i32, i32
  }
  func.func @transform_1(%arg0: i32) -> (i32, i32) {
    %c0_i32 = arith.constant 0 : i32
    %c0_i32_0 = arith.constant 0 : i32
    %c0_i32_1 = arith.constant 0 : i32
    return %c0_i32, %c0_i32_0 : i32, i32
  }
  func.func @transform_2(%arg0: i32) -> (i32, i32) {
    %c0_i32 = arith.constant 0 : i32
    %c0_i32_0 = arith.constant 0 : i32
    %c0_i32_1 = arith.constant 0 : i32
    return %c0_i32, %c0_i32_0 : i32, i32
  }
  func.func @transform_3(%arg0: i32) -> (i32, i32) {
    %c0_i32 = arith.constant 0 : i32
    %c0_i32_0 = arith.constant 0 : i32
    %c0_i32_1 = arith.constant 0 : i32
    return %c0_i32, %c0_i32_0 : i32, i32
  }
  func.func @transform_4(%arg0: i32) -> (i32, i32) {
    %c0_i32 = arith.constant 0 : i32
    %c0_i32_0 = arith.constant 0 : i32
    %c0_i32_1 = arith.constant 0 : i32
    return %c0_i32, %c0_i32_0 : i32, i32
  }
  func.func @transform_5(%arg0: i32) -> (i32, i32) {
    %c0_i32 = arith.constant 0 : i32
    %c0_i32_0 = arith.constant 0 : i32
    %c0_i32_1 = arith.constant 0 : i32
    return %c0_i32, %c0_i32_0 : i32, i32
  }
  func.func @transform_6(%arg0: i32) -> (i32, i32) {
    %c0_i32 = arith.constant 0 : i32
    %c0_i32_0 = arith.constant 0 : i32
    %c0_i32_1 = arith.constant 0 : i32
    return %c0_i32, %c0_i32_0 : i32, i32
  }
  func.func @transform_7(%arg0: i32) -> (i32, i32) {
    %c0_i32 = arith.constant 0 : i32
    %c0_i32_0 = arith.constant 0 : i32
    return %arg0, %c0_i32 : i32, i32
  }
}

</mosaic_0001>

<bundles_post_ra>
// kernel: tpu_custom_call.1
= control target key start
LH: loop header
LB: loop body
LE: loop exit
PB: predicated region body
PF: predicated region fallthrough
CT: control target
= control target key end

     0   :  { %12 = vsyncpa [#allocation3], 0  ;;  %s2741_s0 = inlined_call_operand.vmem [shape: bf16[512,8], index: 0, kind: input, shape index: {}]   ;;  %s2742_s1 = inlined_call_operand.vmem [shape: bf16[8,128], index: 1, kind: input, shape index: {}]   ;;  %s2743_s2 = inlined_call_operand.vmem [shape: f32[1,128], index: 2, kind: input, shape index: {}]   ;;  %s2744_s3 = inlined_call_operand.vmem [shape: bf16[128,128], index: 3, kind: input, shape index: {}]   ;;  %s2745_s4 = inlined_call_operand.vmem [shape: f32[1,128], index: 4, kind: input, shape index: {}]   ;;  %s2746_s5 = inlined_call_operand.vmem [shape: bf16[128,128], index: 5, kind: input, shape index: {}]   ;;  %s2747_s6 = inlined_call_operand.vmem [shape: f32[1,128], index: 6, kind: input, shape index: {}]   ;;  %s2748_s7 = inlined_call_operand.hbm [shape: f32[512,128], index: 7, kind: output, shape index: {}]  }
   0x1   :  { %14 = vsyncpa [#allocation3 + $0x1], 0  ;;  %s2140_s24 = smov 0   ;;  %s2142_s25 = smov 0  }
   0x2   :  { %s2144_s26 = smov 0   ;;  %s2146_s27 = smov 0  }
   0x3 LB: > { %s2161_s28 = sadd.s32 4294967295, %s2095_s27   ;;  %s1571_s29 = sadd.s32 4294967294, %s2095_s27   ;;  %s2095_s27 = sphi %s2146_s27, %s2754_s27   ;;  %s2091_s26 = sphi %s2144_s26, %s2753_s26   ;;  %s2087_s25 = sphi %s2142_s25, %s2752_s25   ;;  %s2083_s24 = sphi %s2140_s24, %s2751_s24  }
   0x4   : > { %s2165_s30 = sadd.s32 1, %s2095_s27   ;;  %s179_s8 = sadd.s32 1, %s2091_s26 }
   0x5   : > { %s176_s9 = ssub.s32 %s2095_s27, %s2165_s30  ;;  %p189_p0 = scmp.ne.s32.totalorder %s2091_s26, %s2087_s25 }
   0x6   : > { %p177_p1 = scmp.eq.s32.totalorder %s176_s9, 0  ;;  %p190_p2 = scmp.eq.s32.totalorder %s2161_s28, 1 }
   0x7   : > { %p195_p3 = scmp.ne.s32.totalorder %s2087_s25, %s2083_s24  ;;  %p196_p4 = scmp.eq.s32.totalorder %s1571_s29, 1 }
   0x8   : > { %s2176_s10 = scalar_select %p177_p1, %s2091_s26, %s179_s8  }
   0x9   : > { %p2178_p5 = por %p190_p2, %p189_p0  ;;  %p2182_p6 = por %p196_p4, %p195_p3 }
   0xa   : > { %p1574_p7 = scmp.ge.s32.totalorder %s2095_s27, 1  ;;  %p241_p8 = scmp.lt.s32.totalorder %s2095_s27, 3 }
   0xc   : > { %p242_p9 = pnand %p1574_p7, %p241_p8 }
   0xd   : > { %s1576_s15 = sshll.u32 (!%p242_p9), %s2161_s28, 5  ;;  %s270_s16 = sand.u32 (!%p242_p9), 1, %s2087_s25  }
   0xe   : > { %245 = sbr.rel (%p242_p9) target bundleno = 1021 (0x3fd), region = 48  ;;  %p274_p10 = scmp.lt.s32.totalorder (!%p242_p9), %s1576_s15, 63 }
   0xf   : > { %s1575_s17 = sshll.u32 (!%p242_p9), %s270_s16, 8  ;;  %s1634_s19 = sshll.u32 (!%p242_p9), %s2161_s28, 12 }
  0x10   : > { %s2693_s23 = scalar_lea.hbm (!%p242_p9), %s2748_s7, %s1634_s19  ;;  %s2701_s28 = scalar_lea.sflag (!%p242_p9), [#allocation3], %s270_s16 }
  0x11   : > { %s2097_s8 = smov (!%p242_p9), [#allocation2]  }
  0x12   : > { %s2039_s9 = sshll.u32 (!%p242_p9), %s2097_s8, 4  ;;  %s2040_s9 = int_to_ptr.vmem [resolvable:$false] %s2039_s9 }
  0x13   : > { %v313_v0 = vld [vmem:[%s2742_s1] sm:$0xf]  ;;  %vm450_vm0 = vcmask 1043456   ;;  %v1891_v1 = vld [vmem:[%s2744_s3 + $0x38] sm:$0xff]   ;;  %s2756_s15 = smov (!%p274_p10, %s1576_s15), 63  ;;  %vm401_vm1 = vcmask 64512  }
  0x14   : > { %1832 = vmatprep.subr.msk.bf16.mxu0 %vm450_vm0, %v313_v0  ;;  %v452_v2 = vsel %vm450_vm0, %v313_v0, 0  ;;  %1833 = vmatprep.subr.msk.bf16.mxu1 %vm450_vm0, %v313_v0  ;;  %s1577_s18 = sshll.u32 %s2756_s15, 2  ;;  %v1892_v9 = vld [vmem:[%s2744_s3 + $0x30] sm:$0xff]   ;;  %v1893_v12 = vld [vmem:[%s2744_s3 + $0x28] sm:$0xff]   ;;  %v1894_v17 = vld [vmem:[%s2744_s3 + $0x20] sm:$0xff]   ;;  %s2041_s13 = scalar_lea.vmem %s2040_s9, 8192 }
  0x15   : > { %1701 = vmatpush3.bf16.msra.mxu0 %v452_v2  ;;  %1831 = vmatpush3.bf16.msra.mxu1 %v452_v2  ;;  %s2198_s21 = scalar_lea.vmem %s2741_s0, %s1577_s18  ;;  %v1895_v18 = vld [vmem:[%s2744_s3 + $0x18] sm:$0xff]   ;;  %v1896_v23 = vld [vmem:[%s2744_s3 + $0x10] sm:$0xff]   ;;  %v1897_v24 = vld [vmem:[%s2744_s3 + $0x8] sm:$0xff]   ;;  %s2625_s18 = scalar_lea.vmem [#allocation2], %s1575_s17 }
  0x16   : > { %1734 = vmatprep.subr.bf16.mxu1 %v1891_v1  ;;  %v1875_v3 = vld [vmem:[%s2198_s21] sm:$0xff]   ;;  %v1876_v4 = vld [vmem:[%s2198_s21 + $0x8] sm:$0xff]   ;;  %v1877_v5 = vld [vmem:[%s2198_s21 + $0x10] sm:$0xff]   ;;  %s1509_s20 = sshll.u32 %s2625_s18, 4  ;;  %s2695_s20 = int_to_ptr.vmem [resolvable:$true] %s1509_s20 }
  0x17   : > { %1702 = vmatprep.mubr.msk.bf16.mxu0 %vm401_vm1, %v1875_v3  ;;  %v1878_v6 = vld [vmem:[%s2198_s21 + $0x18] sm:$0xff]   ;;  %v1879_v7 = vld [vmem:[%s2198_s21 + $0x20] sm:$0xff]   ;;  %v1884_v10 = vld [vmem:[%s2198_s21 + $0x48] sm:$0xff]   ;;  %s2035_s29 = scalar_lea.vmem %s2695_s20, 4096  ;;  %p2042_p0 = scmp.lt.s32.totalorder %s2695_s20, %s2040_s9 }
  0x18   : > { %1703 = vmatmul.mubr.msk.bf16.vlgmr.msra.gmra.mxu0 %vm401_vm1, %v1876_v4  ;;  %v1883_v8 = vld [vmem:[%s2198_s21 + $0x40] sm:$0xff]   ;;  %v1885_v11 = vld [vmem:[%s2198_s21 + $0x50] sm:$0xff]   ;;  %v1880_v13 = vld [vmem:[%s2198_s21 + $0x28] sm:$0xff]   ;;  %p2036_p11 = scmp.ne.s32.totalorder %s2695_s20, %s2035_s29  ;;  %p2043_p1 = scmp.lt.s32.totalorder %s2041_s13, %s2035_s29 }
  0x19   : > { %1706 = vmatprep.mubr.msk.bf16.mxu0 %vm401_vm1, %v1877_v5  ;;  %1718 = vmatprep.mubr.msk.bf16.mxu1 %vm401_vm1, %v1883_v8  ;;  %v1881_v14 = vld [vmem:[%s2198_s21 + $0x30] sm:$0xff]   ;;  %v1886_v15 = vld [vmem:[%s2198_s21 + $0x58] sm:$0xff]   ;;  %v1887_v16 = vld [vmem:[%s2198_s21 + $0x60] sm:$0xff]  }
  0x1a   : > { %1719 = vmatmul.mubr.msk.bf16.vlgmr.msra.gmra.mxu1 %vm401_vm1, %v1884_v10  ;;  %v1882_v19 = vld [vmem:[%s2198_s21 + $0x38] sm:$0xff]   ;;  %v1888_v20 = vld [vmem:[%s2198_s21 + $0x68] sm:$0xff]   ;;  %v1889_v21 = vld [vmem:[%s2198_s21 + $0x70] sm:$0xff]   ;;  %p2037_p12 = pnand %p2036_p11, %p2178_p5  ;;  %p2044_p2 = por %p2043_p1, %p2042_p0 }
  0x1b   : > { %1722 = vmatprep.mubr.msk.bf16.mxu1 %vm401_vm1, %v1885_v11  ;;  %1735 = vmatpush3.bf16.msra.mxu1 %v1891_v1  ;;  %v1890_v22 = vld [vmem:[%s2198_s21 + $0x78] sm:$0xff]   ;;  %v1898_v25 = vld [vmem:[%s2744_s3] sm:$0xff]   ;;  %v1900_v27 = vld [vmem:[%s2746_s5 + $0x30] sm:$0xff]  }
  0x1c   : > { %1736 = vmatprep.subr.bf16.mxu1 %v1892_v9  ;;  %v1899_v26 = vld [vmem:[%s2746_s5 + $0x38] sm:$0xff]   ;;  %v1901_v28 = vld [vmem:[%s2746_s5 + $0x28] sm:$0xff]   ;;  %v1902_v29 = vld [vmem:[%s2746_s5 + $0x20] sm:$0xff]   ;;  %p2038_p13 = pneg %p2037_p12 }
  0x1d   : > { %1782 = vmatprep.subr.bf16.mxu0 %v1899_v26  ;;  %v1903_v30 = vld [vmem:[%s2746_s5 + $0x18] sm:$0xff]   ;;  %v2271_v33 = vld [vmem:[%s2743_s2] ss:$0 sm:$0xff] }
  0x1e   : > { %1783 = vmatpush3.bf16.msra.mxu0 %v1899_v26  ;;  %p2045_p3 = pnand %p2044_p2, %p2038_p13 }
  0x1f   : > { %1737 = vmatpush3.bf16.msra.mxu1 %v1892_v9  ;;  %1784 = vmatprep.subr.bf16.mxu0 %v1900_v27 }
  0x20   : > { %1707 = vmatmul.mubr.msk.bf16.gmra.mxu0 %vm401_vm1, %v1878_v6  ;;  %1738 = vmatprep.subr.bf16.mxu1 %v1893_v12 }
  0x21   : > { %1710 = vmatprep.mubr.msk.bf16.mxu0 %vm401_vm1, %v1879_v7 }
  0x22   : > { %1723 = vmatmul.mubr.msk.bf16.gmra.mxu1 %vm401_vm1, %v1886_v15  ;;  %1785 = vmatpush3.bf16.msra.mxu0 %v1900_v27 }
  0x23   : > { %1726 = vmatprep.mubr.msk.bf16.mxu1 %vm401_vm1, %v1887_v16  ;;  %1739 = vmatpush3.bf16.msra.mxu1 %v1893_v12 }
  0x24   : > { %1740 = vmatprep.subr.bf16.mxu1 %v1894_v17  ;;  %1786 = vmatprep.subr.bf16.mxu0 %v1901_v28 }
  0x26   : > { %1787 = vmatpush3.bf16.msra.mxu0 %v1901_v28 }
  0x27   : > { %1741 = vmatpush3.bf16.msra.mxu1 %v1894_v17  ;;  %1788 = vmatprep.subr.bf16.mxu0 %v1902_v29 }
  0x28   : > { %1711 = vmatmul.mubr.msk.bf16.gmra.mxu0 %vm401_vm1, %v1880_v13  ;;  %1742 = vmatprep.subr.bf16.mxu1 %v1895_v18 }
  0x29   : > { %1714 = vmatprep.mubr.msk.bf16.mxu0 %vm401_vm1, %v1881_v14 }
  0x2a   : > { %1727 = vmatmul.mubr.msk.bf16.gmra.mxu1 %vm401_vm1, %v1888_v20  ;;  %1789 = vmatpush3.bf16.msra.mxu0 %v1902_v29 }
  0x2b   : > { %1730 = vmatprep.mubr.msk.bf16.mxu1 %vm401_vm1, %v1889_v21  ;;  %1743 = vmatpush3.bf16.msra.mxu1 %v1895_v18 }
  0x2c   : > { %1744 = vmatprep.subr.bf16.mxu1 %v1896_v23  ;;  %1790 = vmatprep.subr.bf16.mxu0 %v1903_v30 }
  0x2e   : > { %1791 = vmatpush3.bf16.msra.mxu0 %v1903_v30 }
  0x2f   : > { %1745 = vmatpush3.bf16.msra.mxu1 %v1896_v23 }
  0x30   : > { %1715 = vmatmul.mubr.msk.bf16.gmra.mxu0 %vm401_vm1, %v1882_v19  ;;  %1746 = vmatprep.subr.bf16.mxu1 %v1897_v24 }
  0x32   : > { %1731 = vmatmul.mubr.msk.bf16.gmra.mxu1 %vm401_vm1, %v1890_v22 }
  0x33   : > { %1747 = vmatpush3.bf16.msra.mxu1 %v1897_v24 }
  0x34   : > { %1748 = vmatprep.subr.bf16.mxu1 %v1898_v25 }
  0x37   : > { %1749 = vmatpush3.bf16.msra.mxu1 %v1898_v25 }
  0xd8   : > { %v1704_v31 = vpop.f32.mrf.mxu0 }
  0xd9   : > { %v497_v37 = vadd.f32 %v1704_v31, %v2271_v33 }
  0xda   : > { %v488_v32 = vpop.f32.mrf.mxu0  ;;  %v2277_v42 = vpop.f32.mrf.mxu1 }
  0xdb   : > { %v489_v35 = vadd.f32 %v2271_v33, %v488_v32  ;;  %v617_v45 = vmax.f32 %v497_v37, 0.0 }
  0xdc   : > { %v1705_v34 = vpop.f32.mrf.mxu0  ;;  %v552_v47 = vpop.f32.mrf.mxu1 }
  0xdd   : > { %v500_v36 = vadd.f32 %v1705_v34, %v2271_v33  ;;  %v615_v43 = vmax.f32 %v489_v35, 0.0  ;;  %v553_v21 = vadd.f32 %v2271_v33, %v552_v47 }
  0xde   : > { %v491_v38 = vpop.f32.mrf.mxu0  ;;  %v2279_v51 = vpop.f32.mrf.mxu1 }
  0xdf   : > { %v492_v39 = vadd.f32 %v2271_v33, %v491_v38  ;;  %v618_v40 = vmax.f32 %v500_v36, 0.0  ;;  %v631_v30 = vmax.f32 %v553_v21, 0.0  ;;  %v2326_v21 = vld [vmem:[%s2745_s4] ss:$0 sm:$0xff] }
  0xe0   : > { %v1708_v41 = vpop.f32.mrf.mxu0  ;;  %v555_v56 = vpop.f32.mrf.mxu1 }
  0xe1   : > { %v616_v44 = vmax.f32 %v492_v39, 0.0  ;;  %v648_v49 = vpack.c.bf16 %v618_v40, %v617_v45  ;;  %v513_v54 = vadd.f32 %v1708_v41, %v2271_v33  ;;  %v556_v22 = vadd.f32 %v2271_v33, %v555_v56 }
  0xe2   : > { %v504_v46 = vpop.f32.mrf.mxu0  ;;  %v2285_v60 = vpop.f32.mrf.mxu1 }
  0xe3   : > { %v647_v48 = vpack.c.bf16 %v616_v44, %v615_v43  ;;  %v505_v52 = vadd.f32 %v2271_v33, %v504_v46  ;;  %v621_v63 = vmax.f32 %v513_v54, 0.0  ;;  %v632_v32 = vmax.f32 %v556_v22, 0.0 }
  0xe4   : > { %v1709_v50 = vpop.f32.mrf.mxu0  ;;  %v568_v1 = vpop.f32.mrf.mxu1  ;;  %v561_v44 = vadd.f32 %v2277_v42, %v2271_v33  ;;  %v564_v46 = vadd.f32 %v2279_v51, %v2271_v33  ;;  %v577_v42 = vadd.f32 %v2285_v60, %v2271_v33 }
  0xe5   : > { %v516_v53 = vadd.f32 %v1709_v50, %v2271_v33  ;;  %1750 = vmatprep.mubr.bf16.mxu1 %v647_v48  ;;  %v619_v61 = vmax.f32 %v505_v52, 0.0  ;;  %v655_v40 = vpack.c.bf16 %v632_v32, %v631_v30  ;;  %v569_v41 = vadd.f32 %v2271_v33, %v568_v1 }
  0xe6   : > { %v507_v55 = vpop.f32.mrf.mxu0  ;;  %1751 = vmatmul.mubr.bf16.vlgmr.msra.gmra.mxu1 %v648_v49  ;;  %v1725_v5 = vpop.f32.mrf.mxu1  ;;  %v633_v50 = vmax.f32 %v561_v44, 0.0  ;;  %v634_v52 = vmax.f32 %v564_v46, 0.0 }
  0xe7   : > { %v508_v57 = vadd.f32 %v2271_v33, %v507_v55  ;;  %v622_v58 = vmax.f32 %v516_v53, 0.0  ;;  %v635_v48 = vmax.f32 %v569_v41, 0.0  ;;  %v580_v51 = vadd.f32 %v1725_v5, %v2271_v33 }
  0xe8   : > { %v1712_v59 = vpop.f32.mrf.mxu0  ;;  %v571_v10 = vpop.f32.mrf.mxu1 }
  0xe9   : > { %v620_v62 = vmax.f32 %v508_v57, 0.0  ;;  %v650_v3 = vpack.c.bf16 %v622_v58, %v621_v63  ;;  %v529_v8 = vadd.f32 %v1712_v59, %v2271_v33  ;;  %v572_v43 = vadd.f32 %v2271_v33, %v571_v10 }
  0xea   : > { %v520_v0 = vpop.f32.mrf.mxu0  ;;  %v1728_v14 = vpop.f32.mrf.mxu1  ;;  %v656_v57 = vpack.c.bf16 %v634_v52, %v633_v50  ;;  %v638_v63 = vmax.f32 %v580_v51, 0.0 }
  0xeb   : > { %v649_v2 = vpack.c.bf16 %v620_v62, %v619_v61  ;;  %v521_v6 = vadd.f32 %v2271_v33, %v520_v0  ;;  %v625_v17 = vmax.f32 %v529_v8, 0.0  ;;  %v636_v49 = vmax.f32 %v572_v43, 0.0 }
  0xec   : > { %v1713_v4 = vpop.f32.mrf.mxu0  ;;  %v584_v19 = vpop.f32.mrf.mxu1  ;;  %v637_v62 = vmax.f32 %v577_v42, 0.0 }
  0xed   : > { %v532_v7 = vadd.f32 %v1713_v4, %v2271_v33  ;;  %1754 = vmatprep.mubr.bf16.mxu1 %v649_v2  ;;  %v623_v15 = vmax.f32 %v521_v6, 0.0  ;;  %v657_v54 = vpack.c.bf16 %v636_v49, %v635_v48  ;;  %v585_v55 = vadd.f32 %v2271_v33, %v584_v19 }
  0xee   : > { %v523_v9 = vpop.f32.mrf.mxu0  ;;  %1755 = vmatmul.mubr.bf16.gmra.mxu1 %v650_v3  ;;  %v1729_v25 = vpop.f32.mrf.mxu1  ;;  %v658_v4 = vpack.c.bf16 %v638_v63, %v637_v62  ;;  %v593_v6 = vadd.f32 %v1728_v14, %v2271_v33  ;;  %v1904_v14 = vld [vmem:[%s2746_s5 + $0x10] sm:$0xff]  }
  0xef   : > { %v524_v11 = vadd.f32 %v2271_v33, %v523_v9  ;;  %v626_v12 = vmax.f32 %v532_v7, 0.0  ;;  %v639_v59 = vmax.f32 %v585_v55, 0.0  ;;  %v596_v60 = vadd.f32 %v1729_v25, %v2271_v33  ;;  %1792 = vmatprep.subr.bf16.mxu0 %v1904_v14 }
  0xf0   : > { %v1716_v13 = vpop.f32.mrf.mxu0  ;;  %v587_v35 = vpop.f32.mrf.mxu1  ;;  %v641_v8 = vmax.f32 %v593_v6, 0.0  ;;  %1793 = vmatpush3.bf16.msra.mxu0 %v1904_v14 }
  0xf1   : > { %v624_v16 = vmax.f32 %v524_v11, 0.0  ;;  %v652_v23 = vpack.c.bf16 %v626_v12, %v625_v17  ;;  %v545_v28 = vadd.f32 %v1716_v13, %v2271_v33  ;;  %v588_v56 = vadd.f32 %v2271_v33, %v587_v35 }
  0xf2   : > { %v536_v18 = vpop.f32.mrf.mxu0  ;;  %v1732_v47 = vpop.f32.mrf.mxu1  ;;  %v642_v9 = vmax.f32 %v596_v60, 0.0 }
  0xf3   : > { %v651_v20 = vpack.c.bf16 %v624_v16, %v623_v15  ;;  %v537_v26 = vadd.f32 %v2271_v33, %v536_v18  ;;  %v629_v38 = vmax.f32 %v545_v28, 0.0  ;;  %v640_v61 = vmax.f32 %v588_v56, 0.0  ;;  %v1905_v18 = vld [vmem:[%s2746_s5 + $0x8] sm:$0xff]  }
  0xf4   : > { %v1717_v24 = vpop.f32.mrf.mxu0  ;;  %v600_v53 = vpop.f32.mrf.mxu1  ;;  %v660_v11 = vpack.c.bf16 %v642_v9, %v641_v8  ;;  %v609_v12 = vadd.f32 %v1732_v47, %v2271_v33  ;;  %1794 = vmatprep.subr.bf16.mxu0 %v1905_v18 }
  0xf5   : > { %v548_v27 = vadd.f32 %v1717_v24, %v2271_v33  ;;  %1758 = vmatprep.mubr.bf16.mxu1 %v651_v20  ;;  %v627_v36 = vmax.f32 %v537_v26, 0.0  ;;  %v659_v1 = vpack.c.bf16 %v640_v61, %v639_v59  ;;  %v601_v2 = vadd.f32 %v2271_v33, %v600_v53  ;;  %1795 = vmatpush3.bf16.msra.mxu0 %v1905_v18 }
  0xf6   : > { %v539_v29 = vpop.f32.mrf.mxu0  ;;  %1759 = vmatmul.mubr.bf16.gmra.mxu1 %v652_v23  ;;  %v1733_v58 = vpop.f32.mrf.mxu1  ;;  %v645_v15 = vmax.f32 %v609_v12, 0.0 }
  0xf7   : > { %v540_v31 = vadd.f32 %v2271_v33, %v539_v29  ;;  %v630_v34 = vmax.f32 %v548_v27, 0.0  ;;  %v643_v5 = vmax.f32 %v601_v2, 0.0  ;;  %v612_v13 = vadd.f32 %v1733_v58, %v2271_v33 }
  0xf8   : > { %v603_v0 = vpop.f32.mrf.mxu1 }
  0xf9   : > { %v628_v37 = vmax.f32 %v540_v31, 0.0  ;;  %v654_v45 = vpack.c.bf16 %v630_v34, %v629_v38  ;;  %v604_v3 = vadd.f32 %v2271_v33, %v603_v0  ;;  %v646_v16 = vmax.f32 %v612_v13, 0.0  ;;  %v1906_v33 = vld [vmem:[%s2746_s5] sm:$0xff]  }
  0xfa   : > { %1796 = vmatprep.subr.bf16.mxu0 %v1906_v33 }
  0xfb   : > { %v653_v39 = vpack.c.bf16 %v628_v37, %v627_v36  ;;  %v644_v7 = vmax.f32 %v604_v3, 0.0  ;;  %v662_v17 = vpack.c.bf16 %v646_v16, %v645_v15  ;;  %1797 = vmatpush3.bf16.msra.mxu0 %v1906_v33 }
  0xfd   : > { %1762 = vmatprep.mubr.bf16.mxu1 %v653_v39  ;;  %v661_v10 = vpack.c.bf16 %v644_v7, %v643_v5 }
  0xfe   : > { %1763 = vmatmul.mubr.bf16.gmra.mxu1 %v654_v45 }
  0xff   : > { %1766 = vmatprep.mubr.bf16.mxu1 %v655_v40 }
 0x106   : > { %1767 = vmatmul.mubr.bf16.gmra.mxu1 %v656_v57 }
 0x107   : > { %1770 = vmatprep.mubr.bf16.mxu1 %v657_v54 }
 0x10e   : > { %1771 = vmatmul.mubr.bf16.gmra.mxu1 %v658_v4 }
 0x10f   : > { %1774 = vmatprep.mubr.bf16.mxu1 %v659_v1 }
 0x116   : > { %1775 = vmatmul.mubr.bf16.gmra.mxu1 %v660_v11 }
 0x117   : > { %1778 = vmatprep.mubr.bf16.mxu1 %v661_v10 }
 0x11e   : > { %1779 = vmatmul.mubr.bf16.gmra.mxu1 %v662_v17 }
 0x1a6   : > { %v1752_v19 = vpop.f32.mrf.mxu1 }
 0x1a7   : > { %v777_v25 = vadd.f32 %v1752_v19, %v2326_v21 }
 0x1a8   : > { %v768_v20 = vpop.f32.mrf.mxu1 }
 0x1a9   : > { %v769_v23 = vadd.f32 %v2326_v21, %v768_v20  ;;  %v897_v32 = vmax.f32 %v777_v25, 0.0 }
 0x1aa   : > { %v1753_v22 = vpop.f32.mrf.mxu1 }
 0x1ab   : > { %v780_v24 = vadd.f32 %v1753_v22, %v2326_v21  ;;  %v895_v30 = vmax.f32 %v769_v23, 0.0 }
 0x1ac   : > { %v771_v26 = vpop.f32.mrf.mxu1 }
 0x1ad   : > { %v772_v27 = vadd.f32 %v2326_v21, %v771_v26  ;;  %v898_v28 = vmax.f32 %v780_v24, 0.0 }
 0x1ae   : > { %v1756_v29 = vpop.f32.mrf.mxu1 }
 0x1af   : > { %v896_v31 = vmax.f32 %v772_v27, 0.0  ;;  %v928_v36 = vpack.c.bf16 %v898_v28, %v897_v32  ;;  %v793_v40 = vadd.f32 %v1756_v29, %v2326_v21 }
 0x1b0   : > { %v784_v34 = vpop.f32.mrf.mxu1 }
 0x1b1   : > { %v927_v35 = vpack.c.bf16 %v896_v31, %v895_v30  ;;  %v785_v38 = vadd.f32 %v2326_v21, %v784_v34  ;;  %v901_v48 = vmax.f32 %v793_v40, 0.0 }
 0x1b2   : > { %v1757_v37 = vpop.f32.mrf.mxu1 }
 0x1b3   : > { %v796_v39 = vadd.f32 %v1757_v37, %v2326_v21  ;;  %1798 = vmatprep.mubr.bf16.mxu0 %v927_v35  ;;  %v899_v46 = vmax.f32 %v785_v38, 0.0 }
 0x1b4   : > { %v787_v41 = vpop.f32.mrf.mxu1  ;;  %1799 = vmatmul.mubr.bf16.vlgmr.msra.gmra.mxu0 %v928_v36 }
 0x1b5   : > { %v788_v43 = vadd.f32 %v2326_v21, %v787_v41  ;;  %v902_v44 = vmax.f32 %v796_v39, 0.0 }
 0x1b6   : > { %v1760_v45 = vpop.f32.mrf.mxu1 }
 0x1b7   : > { %v900_v47 = vmax.f32 %v788_v43, 0.0  ;;  %v930_v52 = vpack.c.bf16 %v902_v44, %v901_v48  ;;  %v809_v56 = vadd.f32 %v1760_v45, %v2326_v21 }
 0x1b8   : > { %v800_v49 = vpop.f32.mrf.mxu1 }
 0x1b9   : > { %v929_v50 = vpack.c.bf16 %v900_v47, %v899_v46  ;;  %v801_v54 = vadd.f32 %v2326_v21, %v800_v49  ;;  %v905_v62 = vmax.f32 %v809_v56, 0.0 }
 0x1ba   : > { %v1761_v53 = vpop.f32.mrf.mxu1 }
 0x1bb   : > { %v812_v55 = vadd.f32 %v1761_v53, %v2326_v21  ;;  %1802 = vmatprep.mubr.bf16.mxu0 %v929_v50  ;;  %v903_v59 = vmax.f32 %v801_v54, 0.0 }
 0x1bc   : > { %v803_v57 = vpop.f32.mrf.mxu1  ;;  %1803 = vmatmul.mubr.bf16.gmra.mxu0 %v930_v52 }
 0x1bd   : > { %v804_v42 = vadd.f32 %v2326_v21, %v803_v57  ;;  %v906_v51 = vmax.f32 %v812_v55, 0.0 }
 0x1be   : > { %v1764_v58 = vpop.f32.mrf.mxu1 }
 0x1bf   : > { %v904_v61 = vmax.f32 %v804_v42, 0.0  ;;  %v932_v1 = vpack.c.bf16 %v906_v51, %v905_v62  ;;  %v825_v6 = vadd.f32 %v1764_v58, %v2326_v21 }
 0x1c0   : > { %v816_v63 = vpop.f32.mrf.mxu1 }
 0x1c1   : > { %v931_v0 = vpack.c.bf16 %v904_v61, %v903_v59  ;;  %v817_v3 = vadd.f32 %v2326_v21, %v816_v63  ;;  %v909_v11 = vmax.f32 %v825_v6, 0.0 }
 0x1c2   : > { %v1765_v2 = vpop.f32.mrf.mxu1 }
 0x1c3   : > { %v828_v4 = vadd.f32 %v1765_v2, %v2326_v21  ;;  %1806 = vmatprep.mubr.bf16.mxu0 %v931_v0  ;;  %v907_v9 = vmax.f32 %v817_v3, 0.0 }
 0x1c4   : > { %v819_v60 = vpop.f32.mrf.mxu1  ;;  %1807 = vmatmul.mubr.bf16.gmra.mxu0 %v932_v1 }
 0x1c5   : > { %v820_v5 = vadd.f32 %v2326_v21, %v819_v60  ;;  %v910_v7 = vmax.f32 %v828_v4, 0.0 }
 0x1c6   : > { %v1768_v8 = vpop.f32.mrf.mxu1 }
 0x1c7   : > { %v908_v10 = vmax.f32 %v820_v5, 0.0  ;;  %v934_v15 = vpack.c.bf16 %v910_v7, %v909_v11  ;;  %v841_v18 = vadd.f32 %v1768_v8, %v2326_v21  ;;  %v2363_v5 = vld [vmem:[%s2747_s6] ss:$0 sm:$0xff] }
 0x1c8   : > { %v832_v12 = vpop.f32.mrf.mxu1 }
 0x1c9   : > { %v933_v13 = vpack.c.bf16 %v908_v10, %v907_v9  ;;  %v833_v17 = vadd.f32 %v2326_v21, %v832_v12  ;;  %v913_v25 = vmax.f32 %v841_v18, 0.0 }
 0x1ca   : > { %v1769_v16 = vpop.f32.mrf.mxu1 }
 0x1cb   : > { %v844_v14 = vadd.f32 %v1769_v16, %v2326_v21  ;;  %1810 = vmatprep.mubr.bf16.mxu0 %v933_v13  ;;  %v911_v23 = vmax.f32 %v833_v17, 0.0 }
 0x1cc   : > { %v835_v33 = vpop.f32.mrf.mxu1  ;;  %1811 = vmatmul.mubr.bf16.gmra.mxu0 %v934_v15 }
 0x1cd   : > { %v836_v19 = vadd.f32 %v2326_v21, %v835_v33  ;;  %v914_v20 = vmax.f32 %v844_v14, 0.0 }
 0x1ce   : > { %v1772_v22 = vpop.f32.mrf.mxu1 }
 0x1cf   : > { %v912_v24 = vmax.f32 %v836_v19, 0.0  ;;  %v936_v28 = vpack.c.bf16 %v914_v20, %v913_v25  ;;  %v857_v32 = vadd.f32 %v1772_v22, %v2326_v21 }
 0x1d0   : > { %v848_v26 = vpop.f32.mrf.mxu1 }
 0x1d1   : > { %v935_v27 = vpack.c.bf16 %v912_v24, %v911_v23  ;;  %v849_v30 = vadd.f32 %v2326_v21, %v848_v26  ;;  %v917_v40 = vmax.f32 %v857_v32, 0.0 }
 0x1d2   : > { %v1773_v29 = vpop.f32.mrf.mxu1 }
 0x1d3   : > { %v860_v31 = vadd.f32 %v1773_v29, %v2326_v21  ;;  %1814 = vmatprep.mubr.bf16.mxu0 %v935_v27  ;;  %v915_v38 = vmax.f32 %v849_v30, 0.0 }
 0x1d4   : > { %v851_v34 = vpop.f32.mrf.mxu1  ;;  %1815 = vmatmul.mubr.bf16.gmra.mxu0 %v936_v28 }
 0x1d5   : > { %v852_v35 = vadd.f32 %v2326_v21, %v851_v34  ;;  %v918_v36 = vmax.f32 %v860_v31, 0.0 }
 0x1d6   : > { %v1776_v37 = vpop.f32.mrf.mxu1 }
 0x1d7   : > { %v916_v39 = vmax.f32 %v852_v35, 0.0  ;;  %v938_v44 = vpack.c.bf16 %v918_v36, %v917_v40  ;;  %v873_v48 = vadd.f32 %v1776_v37, %v2326_v21 }
 0x1d8   : > { %v864_v41 = vpop.f32.mrf.mxu1 }
 0x1d9   : > { %v937_v43 = vpack.c.bf16 %v916_v39, %v915_v38  ;;  %v865_v46 = vadd.f32 %v2326_v21, %v864_v41  ;;  %v921_v56 = vmax.f32 %v873_v48, 0.0 }
 0x1da   : > { %v1777_v45 = vpop.f32.mrf.mxu1 }
 0x1db   : > { %v876_v47 = vadd.f32 %v1777_v45, %v2326_v21  ;;  %1818 = vmatprep.mubr.bf16.mxu0 %v937_v43  ;;  %v919_v54 = vmax.f32 %v865_v46, 0.0 }
 0x1dc   : > { %v867_v49 = vpop.f32.mrf.mxu1  ;;  %1819 = vmatmul.mubr.bf16.gmra.mxu0 %v938_v44 }
 0x1dd   : > { %v868_v50 = vadd.f32 %v2326_v21, %v867_v49  ;;  %v922_v52 = vmax.f32 %v876_v47, 0.0 }
 0x1de   : > { %v1780_v53 = vpop.f32.mrf.mxu1 }
 0x1df   : > { %v920_v55 = vmax.f32 %v868_v50, 0.0  ;;  %v940_v51 = vpack.c.bf16 %v922_v52, %v921_v56  ;;  %v889_v62 = vadd.f32 %v1780_v53, %v2326_v21 }
 0x1e0   : > { %v880_v57 = vpop.f32.mrf.mxu1 }
 0x1e1   : > { %v939_v42 = vpack.c.bf16 %v920_v55, %v919_v54  ;;  %v881_v59 = vadd.f32 %v2326_v21, %v880_v57  ;;  %v925_v4 = vmax.f32 %v889_v62, 0.0 }
 0x1e2   : > { %v1781_v58 = vpop.f32.mrf.mxu1 }
 0x1e3   : > { %v892_v61 = vadd.f32 %v1781_v58, %v2326_v21  ;;  %1822 = vmatprep.mubr.bf16.mxu0 %v939_v42  ;;  %v923_v2 = vmax.f32 %v881_v59, 0.0 }
 0x1e4   : > { %v883_v63 = vpop.f32.mrf.mxu1  ;;  %1823 = vmatmul.mubr.bf16.gmra.mxu0 %v940_v51 }
 0x1e5   : > { %v884_v0 = vadd.f32 %v2326_v21, %v883_v63  ;;  %v926_v1 = vmax.f32 %v892_v61, 0.0 }
 0x1e7   : > { %v924_v3 = vmax.f32 %v884_v0, 0.0  ;;  %v942_v60 = vpack.c.bf16 %v926_v1, %v925_v4 }
 0x1e9   : > { %v941_v6 = vpack.c.bf16 %v924_v3, %v923_v2 }
 0x1eb   : > { %1826 = vmatprep.mubr.bf16.mxu0 %v941_v6 }
 0x1ec   : > { %1827 = vmatmul.mubr.bf16.gmra.mxu0 %v942_v60 }
 0x274   : > { %v1800_v7 = vpop.f32.mrf.mxu0 }
 0x275   : > { %v2366_v8 = vadd.f32 %v1800_v7, %v2363_v5 }
 0x276   : > { %v1048_v9 = vpop.f32.mrf.mxu0 }
 0x277   : > { %v2369_v21 = vadd.f32 %v2363_v5, %v1048_v9  ;;  %1179 = vmax.xlane.f32.xlu1 %v2366_v8 }
 0x278   : > { %v1801_v10 = vpop.f32.mrf.mxu0 }
 0x279   : > { %v2373_v11 = vadd.f32 %v1801_v10, %v2363_v5  ;;  %1175 = vmax.xlane.f32.xlu0 %v2369_v21 }
 0x27a   : > { %v1051_v12 = vpop.f32.mrf.mxu0 }
 0x27b   : > { %v2377_v13 = vadd.f32 %v2363_v5, %v1051_v12  ;;  %1181 = vmax.xlane.f32.xlu1 %v2373_v11 }
 0x27c   : > { %v1804_v15 = vpop.f32.mrf.mxu0 }
 0x27d   : > { %1177 = vmax.xlane.f32.xlu0 %v2377_v13  ;;  %v2382_v17 = vadd.f32 %v1804_v15, %v2363_v5 }
 0x27e   : > { %v1064_v16 = vpop.f32.mrf.mxu0 }
 0x27f   : > { %v2389_v19 = vadd.f32 %v2363_v5, %v1064_v16 }
 0x280   : > { %v1805_v14 = vpop.f32.mrf.mxu0 }
 0x281   : > { %v2385_v18 = vadd.f32 %v1805_v14, %v2363_v5  ;;  %1187 = vmax.xlane.f32.xlu0 %v2382_v17 }
 0x282   : > { %v1067_v33 = vpop.f32.mrf.mxu0 }
 0x283   : > { %1189 = vmax.xlane.f32.xlu1 %v2385_v18  ;;  %v2393_v22 = vadd.f32 %v2363_v5, %v1067_v33 }
 0x284   : > { %v1808_v20 = vpop.f32.mrf.mxu0 }
 0x285   : > { %1183 = vmax.xlane.f32.xlu0 %v2389_v19  ;;  %v2397_v24 = vadd.f32 %v1808_v20, %v2363_v5 }
 0x286   : > { %v1080_v23 = vpop.f32.mrf.mxu0 }
 0x287   : > { %1185 = vmax.xlane.f32.xlu1 %v2393_v22  ;;  %v2405_v28 = vadd.f32 %v2363_v5, %v1080_v23 }
 0x288   : > { %v1809_v25 = vpop.f32.mrf.mxu0 }
 0x289   : > { %v2401_v26 = vadd.f32 %v1809_v25, %v2363_v5  ;;  %1195 = vmax.xlane.f32.xlu0 %v2397_v24 }
 0x28a   : > { %v1083_v27 = vpop.f32.mrf.mxu0 }
 0x28b   : > { %1197 = vmax.xlane.f32.xlu1 %v2401_v26  ;;  %v2409_v30 = vadd.f32 %v2363_v5, %v1083_v27 }
 0x28c   : > { %v1812_v29 = vpop.f32.mrf.mxu0 }
 0x28d   : > { %1191 = vmax.xlane.f32.xlu0 %v2405_v28  ;;  %v2413_v32 = vadd.f32 %v1812_v29, %v2363_v5 }
 0x28e   : > { %v1096_v31 = vpop.f32.mrf.mxu0 }
 0x28f   : > { %1193 = vmax.xlane.f32.xlu1 %v2409_v30  ;;  %v2421_v37 = vadd.f32 %v2363_v5, %v1096_v31 }
 0x290   : > { %v1813_v34 = vpop.f32.mrf.mxu0 }
 0x291   : > { %v2417_v35 = vadd.f32 %v1813_v34, %v2363_v5  ;;  %1203 = vmax.xlane.f32.xlu0 %v2413_v32 }
 0x292   : > { %v1099_v36 = vpop.f32.mrf.mxu0 }
 0x293   : > { %1205 = vmax.xlane.f32.xlu1 %v2417_v35  ;;  %v2425_v39 = vadd.f32 %v2363_v5, %v1099_v36 }
 0x294   : > { %v1816_v38 = vpop.f32.mrf.mxu0 }
 0x295   : > { %1199 = vmax.xlane.f32.xlu0 %v2421_v37  ;;  %v2429_v41 = vadd.f32 %v1816_v38, %v2363_v5 }
 0x296   : > { %v1112_v40 = vpop.f32.mrf.mxu0 }
 0x297   : > { %1201 = vmax.xlane.f32.xlu1 %v2425_v39  ;;  %v2437_v46 = vadd.f32 %v2363_v5, %v1112_v40 }
 0x298   : > { %v1817_v43 = vpop.f32.mrf.mxu0 }
 0x299   : > { %v2433_v44 = vadd.f32 %v1817_v43, %v2363_v5  ;;  %1211 = vmax.xlane.f32.xlu0 %v2429_v41 }
 0x29a   : > { %v1115_v45 = vpop.f32.mrf.mxu0 }
 0x29b   : > { %1213 = vmax.xlane.f32.xlu1 %v2433_v44  ;;  %v2441_v48 = vadd.f32 %v2363_v5, %v1115_v45 }
 0x29c   : > { %v1820_v47 = vpop.f32.mrf.mxu0 }
 0x29d   : > { %1207 = vmax.xlane.f32.xlu0 %v2437_v46  ;;  %v2445_v50 = vadd.f32 %v1820_v47, %v2363_v5 }
 0x29e   : > { %v1128_v49 = vpop.f32.mrf.mxu0 }
 0x29f   : > { %1209 = vmax.xlane.f32.xlu1 %v2441_v48  ;;  %v2453_v55 = vadd.f32 %v2363_v5, %v1128_v49 }
 0x2a0   : > { %v1821_v52 = vpop.f32.mrf.mxu0 }
 0x2a1   : > { %v2449_v53 = vadd.f32 %v1821_v52, %v2363_v5  ;;  %1219 = vmax.xlane.f32.xlu0 %v2445_v50 }
 0x2a2   : > { %v1131_v54 = vpop.f32.mrf.mxu0 }
 0x2a3   : > { %1221 = vmax.xlane.f32.xlu1 %v2449_v53  ;;  %v2457_v57 = vadd.f32 %v2363_v5, %v1131_v54 }
 0x2a4   : > { %v1824_v56 = vpop.f32.mrf.mxu0 }
 0x2a5   : > { %1215 = vmax.xlane.f32.xlu0 %v2453_v55  ;;  %v2461_v51 = vadd.f32 %v1824_v56, %v2363_v5 }
 0x2a6   : > { %v1144_v42 = vpop.f32.mrf.mxu0 }
 0x2a7   : > { %1217 = vmax.xlane.f32.xlu1 %v2457_v57  ;;  %v2469_v62 = vadd.f32 %v2363_v5, %v1144_v42 }
 0x2a8   : > { %v1825_v58 = vpop.f32.mrf.mxu0 }
 0x2a9   : > { %v2465_v59 = vadd.f32 %v1825_v58, %v2363_v5  ;;  %1227 = vmax.xlane.f32.xlu0 %v2461_v51 }
 0x2aa   : > { %v1147_v61 = vpop.f32.mrf.mxu0 }
 0x2ab   : > { %1229 = vmax.xlane.f32.xlu1 %v2465_v59  ;;  %v2473_v0 = vadd.f32 %v2363_v5, %v1147_v61 }
 0x2ac   : > { %v1828_v63 = vpop.f32.mrf.mxu0 }
 0x2ad   : > { %1223 = vmax.xlane.f32.xlu0 %v2469_v62  ;;  %v2482_v6 = vadd.f32 %v1828_v63, %v2363_v5 }
 0x2ae   : > { %v1160_v1 = vpop.f32.mrf.mxu0 }
 0x2af   : > { %v2477_v2 = vadd.f32 %v2363_v5, %v1160_v1  ;;  %1225 = vmax.xlane.f32.xlu1 %v2473_v0 }
 0x2b0   : > { %v1829_v3 = vpop.f32.mrf.mxu0 }
 0x2b1   : > { %1231 = vmax.xlane.f32.xlu0 %v2477_v2  ;;  %v2490_v7 = vadd.f32 %v1829_v3, %v2363_v5 }
 0x2b2   : > { %v1163_v4 = vpop.f32.mrf.mxu0 }
 0x2b3   : > { %v2485_v60 = vadd.f32 %v2363_v5, %v1163_v4 }
 0x2b5   : > { %1233 = vmax.xlane.f32.xlu1 %v2485_v60  ;;  %1235 = vmax.xlane.f32.xlu0 %v2482_v6 }
 0x2b9   : > { %1237 = vmax.xlane.f32.xlu1 %v2490_v7 }
 0x300   : > { %v1180_v9 = vpop.xlane.xlu1 %1179 }
 0x301   : > { %v1241_v10 = vsub.f32 %v2366_v8, %v1180_v9 }
 0x302   : > { %v1176_v12 = vpop.xlane.xlu0 %1175 }
 0x303   : > { %v1275_v15 = vmul.f32 1.442695, %v1241_v10  ;;  %v1239_v16 = vsub.f32 %v2369_v21, %v1176_v12 }
 0x304   : > { %v1182_v14 = vpop.xlane.xlu1 %1181 }
 0x305   : > { %1907 = vpow2.f32 %v1275_v15  ;;  %v1271_v33 = vmul.f32 1.442695, %v1239_v16  ;;  %v1242_v20 = vsub.f32 %v2373_v11, %v1182_v14 }
 0x306   : > { %v1178_v23 = vpop.xlane.xlu0 %1177 }
 0x307   : > { %v1277_v25 = vmul.f32 1.442695, %v1242_v20  ;;  %v1240_v27 = vsub.f32 %v2377_v13, %v1178_v23  ;;  %1909 = vpow2.f32 %v1271_v33 }
 0x309   : > { %1911 = vpow2.f32 %v1277_v25  ;;  %v1273_v5 = vmul.f32 1.442695, %v1240_v27 }
 0x30a   : > { %v1188_v29 = vpop.xlane.xlu0 %1187 }
 0x30b   : > { %v1245_v31 = vsub.f32 %v2382_v17, %v1188_v29  ;;  %1913 = vpow2.f32 %v1273_v5 }
 0x30c   : > { %v1190_v8 = vpop.xlane.xlu1 %1189 }
 0x30d   : > { %v1283_v34 = vmul.f32 1.442695, %v1245_v31  ;;  %v1246_v21 = vsub.f32 %v2385_v18, %v1190_v8 }
 0x30e   : > { %v1184_v36 = vpop.xlane.xlu0 %1183 }
 0x30f   : > { %1915 = vpow2.f32 %v1283_v34  ;;  %v1285_v38 = vmul.f32 1.442695, %v1246_v21  ;;  %v1243_v11 = vsub.f32 %v2389_v19, %v1184_v36 }
 0x310   : > { %v1186_v40 = vpop.xlane.xlu1 %1185 }
 0x311   : > { %1917 = vpow2.f32 %v1285_v38  ;;  %v1279_v43 = vmul.f32 1.442695, %v1243_v11  ;;  %v1244_v13 = vsub.f32 %v2393_v22, %v1186_v40 }
 0x312   : > { %v2501_v45 = vpop.eup %1907  ;;  %v1196_v47 = vpop.xlane.xlu0 %1195 }
 0x313   : > { %1919 = vpow2.f32 %v1279_v43  ;;  %v1281_v17 = vmul.f32 1.442695, %v1244_v13  ;;  %v1249_v49 = vsub.f32 %v2397_v24, %v1196_v47  ;;  %1339 = vadd.xlane.f32.xlu0 %v2501_v45 }
 0x314   : > { %v1198_v18 = vpop.xlane.xlu1 %1197  ;;  %v2505_v52 = vpop.eup %1909 }
 0x315   : > { %1921 = vpow2.f32 %v1281_v17  ;;  %v1291_v54 = vmul.f32 1.442695, %v1249_v49  ;;  %v1250_v19 = vsub.f32 %v2401_v26, %v1198_v18 }
 0x316   : > { %v2508_v56 = vpop.eup %1911  ;;  %v1192_v42 = vpop.xlane.xlu0 %1191 }
 0x317   : > { %1923 = vpow2.f32 %v1291_v54  ;;  %v1293_v22 = vmul.f32 1.442695, %v1250_v19  ;;  %v1247_v58 = vsub.f32 %v2405_v28, %v1192_v42  ;;  %1341 = vadd.xlane.f32.xlu1 %v2508_v56  ;;  %1335 = vadd.xlane.f32.xlu0 %v2505_v52 }
 0x318   : > { %v1194_v24 = vpop.xlane.xlu1 %1193  ;;  %v2514_v1 = vpop.eup %1913 }
 0x319   : > { %1925 = vpow2.f32 %v1293_v22  ;;  %v1287_v61 = vmul.f32 1.442695, %v1247_v58  ;;  %v1248_v63 = vsub.f32 %v2409_v30, %v1194_v24 }
 0x31a   : > { %v1204_v3 = vpop.xlane.xlu0 %1203 }
 0x31b   : > { %1927 = vpow2.f32 %v1287_v61  ;;  %v1289_v26 = vmul.f32 1.442695, %v1248_v63  ;;  %v1253_v4 = vsub.f32 %v2413_v32, %v1204_v3  ;;  %1337 = vadd.xlane.f32.xlu1 %v2514_v1 }
 0x31c   : > { %v2518_v9 = vpop.eup %1915  ;;  %v1206_v28 = vpop.xlane.xlu1 %1205 }
 0x31d   : > { %1929 = vpow2.f32 %v1289_v26  ;;  %v1299_v10 = vmul.f32 1.442695, %v1253_v4  ;;  %v1254_v12 = vsub.f32 %v2417_v35, %v1206_v28  ;;  %1347 = vadd.xlane.f32.xlu0 %v2518_v9 }
 0x31e   : > { %v2522_v15 = vpop.eup %1917  ;;  %v1200_v30 = vpop.xlane.xlu0 %1199 }
 0x31f   : > { %1931 = vpow2.f32 %v1299_v10  ;;  %v1301_v16 = vmul.f32 1.442695, %v1254_v12  ;;  %v1251_v14 = vsub.f32 %v2421_v37, %v1200_v30  ;;  %1349 = vadd.xlane.f32.xlu1 %v2522_v15 }
 0x320   : > { %v2526_v32 = vpop.eup %1919  ;;  %v1202_v33 = vpop.xlane.xlu1 %1201 }
 0x321   : > { %1933 = vpow2.f32 %v1301_v16  ;;  %v1295_v20 = vmul.f32 1.442695, %v1251_v14  ;;  %v1252_v23 = vsub.f32 %v2425_v39, %v1202_v33  ;;  %1343 = vadd.xlane.f32.xlu0 %v2526_v32 }
 0x322   : > { %v2530_v35 = vpop.eup %1921  ;;  %v1212_v25 = vpop.xlane.xlu0 %1211 }
 0x323   : > { %1935 = vpow2.f32 %v1295_v20  ;;  %v1297_v27 = vmul.f32 1.442695, %v1252_v23  ;;  %v1257_v5 = vsub.f32 %v2429_v41, %v1212_v25  ;;  %1345 = vadd.xlane.f32.xlu1 %v2530_v35 }
 0x324   : > { %v2534_v37 = vpop.eup %1923  ;;  %v1214_v29 = vpop.xlane.xlu1 %1213 }
 0x325   : > { %1937 = vpow2.f32 %v1297_v27  ;;  %v1307_v31 = vmul.f32 1.442695, %v1257_v5  ;;  %v1258_v8 = vsub.f32 %v2433_v44, %v1214_v29  ;;  %1355 = vadd.xlane.f32.xlu0 %v2534_v37 }
 0x326   : > { %v2538_v39 = vpop.eup %1925  ;;  %v1208_v34 = vpop.xlane.xlu0 %1207 }
 0x327   : > { %1939 = vpow2.f32 %v1307_v31  ;;  %v1309_v21 = vmul.f32 1.442695, %v1258_v8  ;;  %v1255_v36 = vsub.f32 %v2437_v46, %v1208_v34  ;;  %1357 = vadd.xlane.f32.xlu1 %v2538_v39 }
 0x328   : > { %v2542_v41 = vpop.eup %1927  ;;  %v1210_v38 = vpop.xlane.xlu1 %1209 }
 0x329   : > { %1941 = vpow2.f32 %v1309_v21  ;;  %v1303_v11 = vmul.f32 1.442695, %v1255_v36  ;;  %v1256_v40 = vsub.f32 %v2441_v48, %v1210_v38  ;;  %1351 = vadd.xlane.f32.xlu0 %v2542_v41 }
 0x32a   : > { %v2546_v44 = vpop.eup %1929  ;;  %v1220_v43 = vpop.xlane.xlu0 %1219 }
 0x32b   : > { %1943 = vpow2.f32 %v1303_v11  ;;  %v1305_v13 = vmul.f32 1.442695, %v1256_v40  ;;  %v1261_v47 = vsub.f32 %v2445_v50, %v1220_v43  ;;  %1353 = vadd.xlane.f32.xlu1 %v2546_v44 }
 0x32c   : > { %v2550_v46 = vpop.eup %1931  ;;  %v1222_v17 = vpop.xlane.xlu1 %1221 }
 0x32d   : > { %1945 = vpow2.f32 %v1305_v13  ;;  %v1315_v49 = vmul.f32 1.442695, %v1261_v47  ;;  %v1262_v18 = vsub.f32 %v2449_v53, %v1222_v17  ;;  %1363 = vadd.xlane.f32.xlu0 %v2550_v46 }
 0x32e   : > { %v2554_v48 = vpop.eup %1933  ;;  %v1216_v54 = vpop.xlane.xlu0 %1215 }
 0x32f   : > { %1947 = vpow2.f32 %v1315_v49  ;;  %v1317_v19 = vmul.f32 1.442695, %v1262_v18  ;;  %v1259_v42 = vsub.f32 %v2453_v55, %v1216_v54  ;;  %1365 = vadd.xlane.f32.xlu1 %v2554_v48 }
 0x330   : > { %v2558_v50 = vpop.eup %1935  ;;  %v1218_v22 = vpop.xlane.xlu1 %1217 }
 0x331   : > { %1949 = vpow2.f32 %v1317_v19  ;;  %v1311_v58 = vmul.f32 1.442695, %v1259_v42  ;;  %v1260_v24 = vsub.f32 %v2457_v57, %v1218_v22  ;;  %1359 = vadd.xlane.f32.xlu0 %v2558_v50 }
 0x332   : > { %v2562_v53 = vpop.eup %1937  ;;  %v1228_v61 = vpop.xlane.xlu0 %1227 }
 0x333   : > { %1951 = vpow2.f32 %v1311_v58  ;;  %v1313_v63 = vmul.f32 1.442695, %v1260_v24  ;;  %v1265_v3 = vsub.f32 %v2461_v51, %v1228_v61  ;;  %1361 = vadd.xlane.f32.xlu1 %v2562_v53 }
 0x334   : > { %v2566_v55 = vpop.eup %1939  ;;  %v1230_v26 = vpop.xlane.xlu1 %1229 }
 0x335   : > { %1953 = vpow2.f32 %v1313_v63  ;;  %v1323_v4 = vmul.f32 1.442695, %v1265_v3  ;;  %v1266_v28 = vsub.f32 %v2465_v59, %v1230_v26  ;;  %1371 = vadd.xlane.f32.xlu0 %v2566_v55 }
 0x336   : > { %v2570_v57 = vpop.eup %1941  ;;  %v1224_v10 = vpop.xlane.xlu0 %1223 }
 0x337   : > { %1955 = vpow2.f32 %v1323_v4  ;;  %v1325_v12 = vmul.f32 1.442695, %v1266_v28  ;;  %v1263_v30 = vsub.f32 %v2469_v62, %v1224_v10  ;;  %1373 = vadd.xlane.f32.xlu1 %v2570_v57 }
 0x338   : > { %v2574_v51 = vpop.eup %1943  ;;  %v1226_v16 = vpop.xlane.xlu1 %1225 }
 0x339   : > { %1957 = vpow2.f32 %v1325_v12  ;;  %v1319_v14 = vmul.f32 1.442695, %v1263_v30  ;;  %v1264_v33 = vsub.f32 %v2473_v0, %v1226_v16  ;;  %1367 = vadd.xlane.f32.xlu0 %v2574_v51 }
 0x33a   : > { %v2578_v59 = vpop.eup %1945  ;;  %v1232_v20 = vpop.xlane.xlu0 %1231 }
 0x33b   : > { %1959 = vpow2.f32 %v1319_v14  ;;  %v1321_v23 = vmul.f32 1.442695, %v1264_v33  ;;  %v1267_v25 = vsub.f32 %v2477_v2, %v1232_v20  ;;  %1369 = vadd.xlane.f32.xlu1 %v2578_v59 }
 0x33c   : > { %v2582_v62 = vpop.eup %1947 }
 0x33d   : > { %1961 = vpow2.f32 %v1321_v23  ;;  %v1327_v27 = vmul.f32 1.442695, %v1267_v25  ;;  %1379 = vadd.xlane.f32.xlu0 %v2582_v62 }
 0x33e   : > { %v2585_v5 = vpop.eup %1949  ;;  %v1234_v0 = vpop.xlane.xlu1 %1233 }
 0x33f   : > { %v1236_v29 = vpop.xlane.xlu0 %1235  ;;  %1963 = vpow2.f32 %v1327_v27  ;;  %v1268_v31 = vsub.f32 %v2485_v60, %v1234_v0  ;;  %1381 = vadd.xlane.f32.xlu1 %v2585_v5 }
 0x340   : > { %v1269_v8 = vsub.f32 %v2482_v6, %v1236_v29  ;;  %v2590_v2 = vpop.eup %1951 }
 0x341   : > { %v1329_v34 = vmul.f32 1.442695, %v1268_v31  ;;  %1375 = vadd.xlane.f32.xlu0 %v2590_v2 }
 0x342   : > { %v1331_v21 = vmul.f32 1.442695, %v1269_v8  ;;  %v2593_v36 = vpop.eup %1953  ;;  %v1238_v38 = vpop.xlane.xlu1 %1237 }
 0x343   : > { %1965 = vpow2.f32 %v1329_v34  ;;  %v1270_v11 = vsub.f32 %v2490_v7, %v1238_v38  ;;  %1377 = vadd.xlane.f32.xlu1 %v2593_v36 }
 0x344   : > { %v2597_v40 = vpop.eup %1955  ;;  %1967 = vpow2.f32 %v1331_v21 }
 0x345   : > { %v1333_v6 = vmul.f32 1.442695, %v1270_v11  ;;  %1387 = vadd.xlane.f32.xlu0 %v2597_v40 }
 0x346   : > { %v2600_v60 = vpop.eup %1957 }
 0x347   : > { %1969 = vpow2.f32 %v1333_v6  ;;  %1389 = vadd.xlane.f32.xlu1 %v2600_v60 }
 0x348   : > { %v2603_v43 = vpop.eup %1959 }
 0x349   : > { %1383 = vadd.xlane.f32.xlu0 %v2603_v43 }
 0x34a   : > { %v2606_v13 = vpop.eup %1961 }
 0x34b   : > { %1385 = vadd.xlane.f32.xlu1 %v2606_v13 }
 0x34c   : > { %v2609_v7 = vpop.eup %1963 }
 0x34d   : > { %1391 = vadd.xlane.f32.xlu0 %v2609_v7 }
 0x350   : > { %v2612_v47 = vpop.eup %1965 }
 0x351   : > { %v2614_v17 = vpop.eup %1967  ;;  %1393 = vadd.xlane.f32.xlu1 %v2612_v47 }
 0x352   : > { %1395 = vadd.xlane.f32.xlu0 %v2614_v17 }
 0x354   : > { %v2618_v49 = vpop.eup %1969 }
 0x355   : > { %1397 = vadd.xlane.f32.xlu1 %v2618_v49 }
 0x39c   : > { %v1340_v18 = vpop.xlane.xlu0 %1339 }
 0x39d   : > { %1971 = vrcp.f32 %v1340_v18 }
 0x3a0   : > { %v1342_v54 = vpop.xlane.xlu1 %1341  ;;  %v1336_v19 = vpop.xlane.xlu0 %1335 }
 0x3a1   : > { %1973 = vrcp.f32 %v1342_v54 }
 0x3a2   : > { %1975 = vrcp.f32 %v1336_v19 }
 0x3a4   : > { %v1338_v42 = vpop.xlane.xlu1 %1337 }
 0x3a5   : > { %1977 = vrcp.f32 %v1338_v42 }
 0x3a6   : > { %v1348_v22 = vpop.xlane.xlu0 %1347 }
 0x3a7   : > { %1979 = vrcp.f32 %v1348_v22 }
 0x3a8   : > { %v1350_v58 = vpop.xlane.xlu1 %1349 }
 0x3a9   : > { %1981 = vrcp.f32 %v1350_v58 }
 0x3aa   : > { %v1972_v24 = vpop.eup %1971  ;;  %v1344_v61 = vpop.xlane.xlu0 %1343 }
 0x3ab   : > { %v1433_v63 = vmul.f32 %v1972_v24, %v2501_v45  ;;  %1983 = vrcp.f32 %v1344_v61 }
 0x3ac   : > { %v1346_v3 = vpop.xlane.xlu1 %1345 }
 0x3ad   : > { %1465 = vst [vmem:[%s2625_s18 + $0x10] sm:$0xff] %v1433_v63  ;;  %1985 = vrcp.f32 %v1346_v3 }
 0x3ae   : > { %v1974_v26 = vpop.eup %1973  ;;  %v1356_v4 = vpop.xlane.xlu0 %1355 }
 0x3af   : > { %v1976_v28 = vpop.eup %1975  ;;  %v1434_v10 = vmul.f32 %v1974_v26, %v2508_v56  ;;  %1987 = vrcp.f32 %v1356_v4 }
 0x3b0   : > { %v1431_v12 = vmul.f32 %v1976_v28, %v2505_v52  ;;  %v1358_v45 = vpop.xlane.xlu1 %1357 }
 0x3b1   : > { %1466 = vst [vmem:[%s2625_s18 + $0x18] sm:$0xff] %v1434_v10  ;;  %1989 = vrcp.f32 %v1358_v45 }
 0x3b2   : > { %v1978_v30 = vpop.eup %1977  ;;  %1463 = vst [vmem:[%s2625_s18] sm:$0xff] %v1431_v12  ;;  %v1352_v16 = vpop.xlane.xlu0 %1351 }
 0x3b3   : > { %v1432_v14 = vmul.f32 %v1978_v30, %v2514_v1  ;;  %1991 = vrcp.f32 %v1352_v16 }
 0x3b4   : > { %v1980_v33 = vpop.eup %1979  ;;  %v1354_v20 = vpop.xlane.xlu1 %1353 }
 0x3b5   : > { %1464 = vst [vmem:[%s2625_s18 + $0x8] sm:$0xff] %v1432_v14  ;;  %v1437_v56 = vmul.f32 %v1980_v33, %v2518_v9  ;;  %1993 = vrcp.f32 %v1354_v20 }
 0x3b6   : > { %v1982_v23 = vpop.eup %1981  ;;  %v1364_v52 = vpop.xlane.xlu0 %1363 }
 0x3b7   : > { %1469 = vst [vmem:[%s2625_s18 + $0x30] sm:$0xff] %v1437_v56  ;;  %v1438_v25 = vmul.f32 %v1982_v23, %v2522_v15  ;;  %1995 = vrcp.f32 %v1364_v52 }
 0x3b8   : > { %v1984_v27 = vpop.eup %1983  ;;  %v1366_v0 = vpop.xlane.xlu1 %1365 }
 0x3b9   : > { %1470 = vst [vmem:[%s2625_s18 + $0x38] sm:$0xff] %v1438_v25  ;;  %v1435_v1 = vmul.f32 %v1984_v27, %v2526_v32  ;;  %1997 = vrcp.f32 %v1366_v0 }
 0x3ba   : > { %v1986_v29 = vpop.eup %1985  ;;  %v1360_v31 = vpop.xlane.xlu0 %1359 }
 0x3bb   : > { %1467 = vst [vmem:[%s2625_s18 + $0x20] sm:$0xff] %v1435_v1  ;;  %v1436_v9 = vmul.f32 %v1986_v29, %v2530_v35  ;;  %1999 = vrcp.f32 %v1360_v31 }
 0x3bc   : > { %v1988_v8 = vpop.eup %1987  ;;  %v1362_v34 = vpop.xlane.xlu1 %1361 }
 0x3bd   : > { %1468 = vst [vmem:[%s2625_s18 + $0x28] sm:$0xff] %v1436_v9  ;;  %v1441_v15 = vmul.f32 %v1988_v8, %v2534_v37  ;;  %2001 = vrcp.f32 %v1362_v34 }
 0x3be   : > { %v1990_v21 = vpop.eup %1989  ;;  %v1372_v38 = vpop.xlane.xlu0 %1371 }
 0x3bf   : > { %1473 = vst [vmem:[%s2625_s18 + $0x50] sm:$0xff] %v1441_v15  ;;  %v1442_v32 = vmul.f32 %v1990_v21, %v2538_v39  ;;  %2003 = vrcp.f32 %v1372_v38 }
 0x3c0   : > { %v1992_v11 = vpop.eup %1991  ;;  %v1374_v6 = vpop.xlane.xlu1 %1373 }
 0x3c1   : > { %1474 = vst [vmem:[%s2625_s18 + $0x58] sm:$0xff] %v1442_v32  ;;  %v1439_v35 = vmul.f32 %v1992_v11, %v2542_v41  ;;  %2005 = vrcp.f32 %v1374_v6 }
 0x3c2   : > { %v1994_v18 = vpop.eup %1993  ;;  %v1368_v54 = vpop.xlane.xlu0 %1367 }
 0x3c3   : > { %1471 = vst [vmem:[%s2625_s18 + $0x40] sm:$0xff] %v1439_v35  ;;  %v1440_v37 = vmul.f32 %v1994_v18, %v2546_v44  ;;  %2007 = vrcp.f32 %v1368_v54 }
 0x3c4   : > { %v1996_v19 = vpop.eup %1995  ;;  %v1370_v42 = vpop.xlane.xlu1 %1369 }
 0x3c5   : > { %1472 = vst [vmem:[%s2625_s18 + $0x48] sm:$0xff] %v1440_v37  ;;  %v1445_v39 = vmul.f32 %v1996_v19, %v2550_v46  ;;  %2009 = vrcp.f32 %v1370_v42 }
 0x3c6   : > { %v1998_v22 = vpop.eup %1997  ;;  %v1380_v58 = vpop.xlane.xlu0 %1379 }
 0x3c7   : > { %1477 = vst [vmem:[%s2625_s18 + $0x70] sm:$0xff] %v1445_v39  ;;  %v1446_v41 = vmul.f32 %v1998_v22, %v2554_v48  ;;  %2011 = vrcp.f32 %v1380_v58 }
 0x3c8   : > { %v2000_v24 = vpop.eup %1999  ;;  %v1382_v61 = vpop.xlane.xlu1 %1381 }
 0x3c9   : > { %1478 = vst [vmem:[%s2625_s18 + $0x78] sm:$0xff] %v1446_v41  ;;  %v1443_v44 = vmul.f32 %v2000_v24, %v2558_v50  ;;  %2013 = vrcp.f32 %v1382_v61 }
 0x3ca   : > { %v2002_v63 = vpop.eup %2001  ;;  %v1376_v3 = vpop.xlane.xlu0 %1375 }
 0x3cb   : > { %1475 = vst [vmem:[%s2625_s18 + $0x60] sm:$0xff] %v1443_v44  ;;  %v1444_v46 = vmul.f32 %v2002_v63, %v2562_v53  ;;  %2015 = vrcp.f32 %v1376_v3 }
 0x3cc   : > { %v2004_v26 = vpop.eup %2003  ;;  %v1378_v4 = vpop.xlane.xlu1 %1377 }
 0x3cd   : > { %1476 = vst [vmem:[%s2625_s18 + $0x68] sm:$0xff] %v1444_v46  ;;  %v1449_v48 = vmul.f32 %v2004_v26, %v2566_v55  ;;  %2017 = vrcp.f32 %v1378_v4 }
 0x3ce   : > { %v2006_v28 = vpop.eup %2005  ;;  %v1388_v10 = vpop.xlane.xlu0 %1387 }
 0x3cf   : > { %1481 = vst [vmem:[%s2625_s18 + $0x90] sm:$0xff] %v1449_v48  ;;  %v1450_v50 = vmul.f32 %v2006_v28, %v2570_v57  ;;  %2019 = vrcp.f32 %v1388_v10 }
 0x3d0   : > { %v2008_v12 = vpop.eup %2007  ;;  %v1390_v45 = vpop.xlane.xlu1 %1389 }
 0x3d1   : > { %1482 = vst [vmem:[%s2625_s18 + $0x98] sm:$0xff] %v1450_v50  ;;  %v1447_v53 = vmul.f32 %v2008_v12, %v2574_v51  ;;  %2021 = vrcp.f32 %v1390_v45 }
 0x3d2   : > { %v2010_v30 = vpop.eup %2009  ;;  %v1384_v16 = vpop.xlane.xlu0 %1383 }
 0x3d3   : > { %1479 = vst [vmem:[%s2625_s18 + $0x80] sm:$0xff] %v1447_v53  ;;  %v1448_v55 = vmul.f32 %v2010_v30, %v2578_v59  ;;  %2023 = vrcp.f32 %v1384_v16 }
 0x3d4   : > { %v2012_v14 = vpop.eup %2011  ;;  %v1386_v33 = vpop.xlane.xlu1 %1385 }
 0x3d5   : > { %1480 = vst [vmem:[%s2625_s18 + $0x88] sm:$0xff] %v1448_v55  ;;  %v1453_v57 = vmul.f32 %v2012_v14, %v2582_v62  ;;  %2025 = vrcp.f32 %v1386_v33 }
 0x3d6   : > { %v2014_v20 = vpop.eup %2013  ;;  %v1392_v56 = vpop.xlane.xlu0 %1391 }
 0x3d7   : > { %1485 = vst [vmem:[%s2625_s18 + $0xb0] sm:$0xff] %v1453_v57  ;;  %v1454_v51 = vmul.f32 %v2014_v20, %v2585_v5  ;;  %2027 = vrcp.f32 %v1392_v56 }
 0x3d8   : > { %v2016_v23 = vpop.eup %2015 }
 0x3d9   : > { %1486 = vst [vmem:[%s2625_s18 + $0xb8] sm:$0xff] %v1454_v51  ;;  %v1451_v59 = vmul.f32 %v2016_v23, %v2590_v2 }
 0x3da   : > { %v2018_v52 = vpop.eup %2017  ;;  %v1394_v25 = vpop.xlane.xlu1 %1393 }
 0x3db   : > { %1483 = vst [vmem:[%s2625_s18 + $0xa0] sm:$0xff] %v1451_v59  ;;  %v1452_v27 = vmul.f32 %v2018_v52, %v2593_v36  ;;  %2029 = vrcp.f32 %v1394_v25  ;;  %v1396_v62 = vpop.xlane.xlu0 %1395 }
 0x3dc   : > { %v2020_v0 = vpop.eup %2019  ;;  %2031 = vrcp.f32 %v1396_v62 }
 0x3dd   : > { %1484 = vst [vmem:[%s2625_s18 + $0xa8] sm:$0xff] %v1452_v27  ;;  %v1457_v5 = vmul.f32 %v2020_v0, %v2597_v40 }
 0x3de   : > { %v2022_v1 = vpop.eup %2021  ;;  %v1398_v29 = vpop.xlane.xlu1 %1397 }
 0x3df   : > { %1489 = vst [vmem:[%s2625_s18 + $0xd0] sm:$0xff] %v1457_v5  ;;  %v1458_v2 = vmul.f32 %v2022_v1, %v2600_v60  ;;  %2033 = vrcp.f32 %v1398_v29 }
 0x3e0   : > { %v2024_v31 = vpop.eup %2023 }
 0x3e1   : > { %1490 = vst [vmem:[%s2625_s18 + $0xd8] sm:$0xff] %v1458_v2  ;;  %v1455_v36 = vmul.f32 %v2024_v31, %v2603_v43 }
 0x3e2   : > { %v2026_v9 = vpop.eup %2025 }
 0x3e3   : > { %1487 = vst [vmem:[%s2625_s18 + $0xc0] sm:$0xff] %v1455_v36  ;;  %v1456_v8 = vmul.f32 %v2026_v9, %v2606_v13 }
 0x3e4   : > { %v2028_v34 = vpop.eup %2027 }
 0x3e5   : > { %1488 = vst [vmem:[%s2625_s18 + $0xc8] sm:$0xff] %v1456_v8  ;;  %v1459_v40 = vmul.f32 %v2028_v34, %v2609_v7 }
 0x3e7   : > { %1491 = vst [vmem:[%s2625_s18 + $0xe0] sm:$0xff] %v1459_v40 }
 0x3e8   : > { %v2030_v60 = vpop.eup %2029 }
 0x3e9   : > { %v2032_v15 = vpop.eup %2031  ;;  %v1460_v21 = vmul.f32 %v2030_v60, %v2612_v47 }
 0x3ea   : > { %v1461_v43 = vmul.f32 %v2032_v15, %v2614_v17 }
 0x3eb   : > { %1492 = vst [vmem:[%s2625_s18 + $0xe8] sm:$0xff] %v1460_v21 }
 0x3ec   : > { %v2034_v38 = vpop.eup %2033  ;;  %1493 = vst [vmem:[%s2625_s18 + $0xf0] sm:$0xff] %v1461_v43 }
 0x3ed   : > { %v1462_v13 = vmul.f32 %v2034_v38, %v2618_v49 }
 0x3ef   : > { %1494 = vst [vmem:[%s2625_s18 + $0xf8] sm:$0xff] %v1462_v13 }
 0x3f0   : > { %2048 = shalt.err (!%p2045_p3)
}
 0x3f1   : > { %s2049_s14 = scalar_lea.hbm %s2693_s23, 4096  ;;  %s2053_s17 = scalar_lea.hbm %s2748_s7, 8192 }
 0x3f2   : > { %p2050_p4 = scmp.ne.s32.totalorder %s2693_s23, %s2049_s14  ;;  %p2054_p9 = scmp.lt.s32.totalorder %s2693_s23, %s2748_s7 }
 0x3f3   : > { %p2055_p10 = scmp.lt.s32.totalorder %s2053_s17, %s2049_s14 }
 0x3f4   : > { %p2051_p7 = pnand %p2050_p4, %p2178_p5 }
 0x3f5   : > { %p2056_p11 = por %p2055_p10, %p2054_p9 }
 0x3f6   : > { %p2052_p8 = pneg %p2051_p7 }
 0x3f8   : > { %p2057_p12 = pnand %p2056_p11, %p2052_p8 }
 0x3fa   : > { %2060 = shalt.err (!%p2057_p12)
}
 0x3fb   : > { %s2098_s22 = smov 128   ;;  %s2099_s21 = smov 8  }
 0x3fc   : > { %1834 = dma.vmem_to_hbm [thread:$0]  (%p2178_p5), %s2695_s20, 4096, %s2693_s23, %s2701_s28, %s2098_s22, %s2098_s22, %s2099_s21  }
 0x3fd PF: > { %p1840_p13 = scmp.ge.s32.totalorder %s2095_s27, 2  ;;  %s1524_s29 = sand.u32 1, %s2083_s24  }
 0x3fe   : > { %s1525_s8 = scalar_lea.sflag [#allocation3], %s1524_s29 }
 0x3ff   : > { %p1837_p0 = pnand %p1840_p13, %p2182_p6 }
 0x401   : > { %p1838_p1 = pneg %p1837_p0 }
 0x403   : > { %2078 = dma.done.wait (%p1838_p1), %s1525_s8, 4096  }
 0x404   : > { %2080 = vsyncadd (%p1838_p1), %s1525_s8, 4294963200  ;;  %p17_p2 = scmp.ge.s32.totalorder %s2165_s30, 4   ;;  %s2751_s24 = smov %s2087_s25 }
 0x405   : > { %s2752_s25 = smov %s2091_s26  ;;  %s2753_s26 = smov %s2176_s10 }
 0x406   : > { %s2754_s27 = smov %s2165_s30  ;;  %19 = sbr.rel (!%p17_p2) target bundleno = 3 (0x3), region = 83 }
 0x40b   :  { %1530 = vsyncpa [#allocation3], 1 }
 0x40c   :  { %1532 = vsyncpa [#allocation3 + $0x1], 1 }

</bundles_post_ra>
